<compile_context>
chip_gen: v5e
topology: v5e:2x2
jax: 0.10.0
libtpu: 0.0.40
codegen_flags: <defaults>
</compile_context>

<pallas_src>
import functools
import math

import jax
import jax.numpy as jnp
from jax.experimental import pallas as pl
from jax.experimental.pallas import tpu as pltpu

_VMEM = pl.BlockSpec(memory_space=pltpu.MemorySpace.VMEM)


@functools.lru_cache(maxsize=None)
def _vmem_limit():
    """Generation-aware scoped-VMEM limit: ~3/4 of physical, capped at 96 MiB,
    never below 32 MiB.  Falls back to 48 MiB (safe on v7x) if the query fails."""
    cap = 64 * 1024 * 1024
    try:
        info_fn = getattr(pltpu, "get_tpu_info", None)
        if info_fn is not None:
            cap = int(getattr(info_fn(), "vmem_capacity_bytes", cap))
    except Exception:
        cap = 64 * 1024 * 1024
    return max(32 * 1024 * 1024, min((cap * 3) // 4, 96 * 1024 * 1024))


def _pick_tile(dim, pref, quantum):
    """Largest tile <= pref that divides `dim` and is a multiple of `quantum`;
    falls back to the full dim (a full-extent block is always legal)."""
    if dim <= pref:
        return dim
    t = (pref // quantum) * quantum
    while t >= quantum:
        if dim % t == 0:
            return t
        t -= quantum
    return dim


# ---------------------------------------------------------------------------
# Tiled matmul (+ bias + optional activation) kernel
# ---------------------------------------------------------------------------
def _linear_kernel(x_ref, w_ref, b_ref, o_ref, acc_ref, *, act):
    @pl.when(pl.program_id(2) == 0)
    def _():
        acc_ref[...] = jnp.zeros_like(acc_ref)

    acc_ref[...] += jnp.dot(x_ref[...], w_ref[...],
                            preferred_element_type=jnp.float32)

    @pl.when(pl.program_id(2) == pl.num_programs(2) - 1)
    def _():
        y = acc_ref[...] + b_ref[...]
        if act == "gelu":
            # TODO(synk): exact erf-GELU of HF BERT replaced with the tanh
            # approximation to guarantee Mosaic lowering.
            y = 0.5 * y * (1.0 + jnp.tanh(
                0.7978845608028654 * (y + 0.044715 * y * y * y)))
        elif act == "tanh":
            y = jnp.tanh(y)
        o_ref[...] = y.astype(o_ref.dtype)


def linear(x, w, b, act="none", out_dtype=jnp.bfloat16,
           tm_pref=512, tn_pref=1024, tk_pref=1024):
    M, K = x.shape
    N = w.shape[1]
    tm = _pick_tile(M, tm_pref, 16)     # bf16 packs 2 rows / sublane
    tn = _pick_tile(N, tn_pref, 256)    # keep MXU-aligned on v6e/v7x
    tk = _pick_tile(K, tk_pref, 256)
    grid = (M // tm, N // tn, K // tk)
    return pl.pallas_call(
        functools.partial(_linear_kernel, act=act),
        out_shape=jax.ShapeDtypeStruct((M, N), out_dtype),
        grid=grid,
        in_specs=[
            pl.BlockSpec((tm, tk), lambda i, j, k: (i, k)),
            pl.BlockSpec((tk, tn), lambda i, j, k: (k, j)),
            pl.BlockSpec((1, tn), lambda i, j, k: (0, j)),
        ],
        out_specs=pl.BlockSpec((tm, tn), lambda i, j, k: (i, j)),
        scratch_shapes=[pltpu.VMEM((tm, tn), jnp.float32)],
        compiler_params=pltpu.CompilerParams(
            dimension_semantics=("parallel", "parallel", "arbitrary"),
            vmem_limit_bytes=_vmem_limit()),
    )(x.astype(jnp.bfloat16), w.astype(jnp.bfloat16),
      b.reshape(1, N).astype(jnp.float32))


# ---------------------------------------------------------------------------
# Tiled matmul with fused bias + residual add + LayerNorm epilogue
# (feature dim N is kept whole so the LN reduction stays inside one block)
# ---------------------------------------------------------------------------
def _linear_res_ln_kernel(x_ref, w_ref, b_ref, r_ref, g_ref, be_ref,
                          o_ref, acc_ref, *, eps):
    @pl.when(pl.program_id(1) == 0)
    def _():
        acc_ref[...] = jnp.zeros_like(acc_ref)

    acc_ref[...] += jnp.dot(x_ref[...], w_ref[...],
                            preferred_element_type=jnp.float32)

    @pl.when(pl.program_id(1) == pl.num_programs(1) - 1)
    def _():
        y = acc_ref[...] + b_ref[...] + r_ref[...].astype(jnp.float32)
        mean = jnp.mean(y, axis=-1, keepdims=True)
        var = jnp.mean(jnp.square(y - mean), axis=-1, keepdims=True)
        o_ref[...] = ((y - mean) * jax.lax.rsqrt(var + eps) * g_ref[...]
                      + be_ref[...]).astype(o_ref.dtype)


def linear_residual_ln(x, w, b, res, gamma, beta, eps=1e-12,
                       out_dtype=jnp.bfloat16, tm_pref=512, tk_pref=1024):
    M, K = x.shape
    N = w.shape[1]
    tm = _pick_tile(M, tm_pref, 16)
    tk = _pick_tile(K, tk_pref, 256)
    grid = (M // tm, K // tk)
    return pl.pallas_call(
        functools.partial(_linear_res_ln_kernel, eps=eps),
        out_shape=jax.ShapeDtypeStruct((M, N), out_dtype),
        grid=grid,
        in_specs=[
            pl.BlockSpec((tm, tk), lambda i, k: (i, k)),
            pl.BlockSpec((tk, N), lambda i, k: (k, 0)),
            pl.BlockSpec((1, N), lambda i, k: (0, 0)),
            pl.BlockSpec((tm, N), lambda i, k: (i, 0)),
            pl.BlockSpec((1, N), lambda i, k: (0, 0)),
            pl.BlockSpec((1, N), lambda i, k: (0, 0)),
        ],
        out_specs=pl.BlockSpec((tm, N), lambda i, k: (i, 0)),
        scratch_shapes=[pltpu.VMEM((tm, N), jnp.float32)],
        compiler_params=pltpu.CompilerParams(
            dimension_semantics=("parallel", "arbitrary"),
            vmem_limit_bytes=_vmem_limit()),
    )(x.astype(jnp.bfloat16), w.astype(jnp.bfloat16),
      b.reshape(1, N).astype(jnp.float32),
      res, gamma.reshape(1, N).astype(jnp.float32),
      beta.reshape(1, N).astype(jnp.float32))


# ---------------------------------------------------------------------------
# Standalone LayerNorm (embeddings)
# ---------------------------------------------------------------------------
def _ln_kernel(x_ref, g_ref, b_ref, o_ref, *, eps):
    x = x_ref[...].astype(jnp.float32)
    mean = jnp.mean(x, axis=-1, keepdims=True)
    var = jnp.mean(jnp.square(x - mean), axis=-1, keepdims=True)
    o_ref[...] = ((x - mean) * jax.lax.rsqrt(var + eps) * g_ref[...]
                  + b_ref[...]).astype(o_ref.dtype)


def layernorm(x, g, b, eps=1e-12, out_dtype=jnp.bfloat16, tm_pref=512):
    M, H = x.shape
    tm = _pick_tile(M, tm_pref, 16)
    return pl.pallas_call(
        functools.partial(_ln_kernel, eps=eps),
        out_shape=jax.ShapeDtypeStruct((M, H), out_dtype),
        grid=(M // tm,),
        in_specs=[
            pl.BlockSpec((tm, H), lambda i: (i, 0)),
            pl.BlockSpec((1, H), lambda i: (0, 0)),
            pl.BlockSpec((1, H), lambda i: (0, 0)),
        ],
        out_specs=pl.BlockSpec((tm, H), lambda i: (i, 0)),
        compiler_params=pltpu.CompilerParams(
            dimension_semantics=("parallel",),
            vmem_limit_bytes=_vmem_limit()),
    )(x, g.reshape(1, H).astype(jnp.float32),
      b.reshape(1, H).astype(jnp.float32))


# ---------------------------------------------------------------------------
# Multi-head softmax attention
#   grid = (B2, head_groups); q/k/v are read straight out of the fused QKV
#   output [B2, S, 3H] via block index maps (no HBM transposes), the context is
#   written lane-dense into [B2, S, H].
# ---------------------------------------------------------------------------
def _attn_kernel(q_ref, k_ref, v_ref, mb_ref, o_ref, *, hpg, Dh, offs, scale):
    qb = q_ref[0]                                  # [S, Wq] bf16
    kb = k_ref[0]
    vb = v_ref[0]
    mb = mb_ref[0].astype(jnp.float32)             # [1, S]
    oq, ok, ov = offs
    for hh in range(hpg):                          # static unroll over the group
        q = qb[:, oq + hh * Dh: oq + (hh + 1) * Dh] * scale   # fold 1/sqrt(Dh) into q
        k = kb[:, ok + hh * Dh: ok + (hh + 1) * Dh]
        v = vb[:, ov + hh * Dh: ov + (hh + 1) * Dh]
        s = jax.lax.dot_general(q, k, (((1,), (1,)), ((), ())),
                                preferred_element_type=jnp.float32)    # [S, S]
        s = s + mb
        m = jnp.max(s, axis=-1, keepdims=True)
        e = jnp.exp(s - m)
        p = (e * pl.reciprocal(jnp.sum(e, axis=-1, keepdims=True),
                               approx=True)).astype(vb.dtype)
        ctx = jnp.dot(p, v, preferred_element_type=jnp.float32)        # [S, Dh]
        o_ref[0, :, hh * Dh:(hh + 1) * Dh] = ctx.astype(o_ref.dtype)


def _heads_per_group(heads, Dh):
    """Heads per grid step so the group width hpg*Dh is a multiple of 128 lanes."""
    if Dh % 128 == 0:
        return 1
    if 128 % Dh == 0:
        g = 128 // Dh
        if heads % g == 0:
            return g
    return heads


def attention(qkv, mask_bias, *, heads, Dh, scale):
    B2, S, threeH = qkv.shape
    H = heads * Dh
    hpg = _heads_per_group(heads, Dh)
    gD = hpg * Dh

    if gD % 128 == 0:
        # Lane-aligned head groups: slice q/k/v blocks straight out of [B2,S,3H].
        HG = heads // hpg
        q_spec = pl.BlockSpec((1, S, gD), lambda b, g: (b, 0, g))
        k_spec = pl.BlockSpec((1, S, gD), lambda b, g: (b, 0, HG + g))
        v_spec = pl.BlockSpec((1, S, gD), lambda b, g: (b, 0, 2 * HG + g))
        out_spec = pl.BlockSpec((1, S, gD), lambda b, g: (b, 0, g))
        offs = (0, 0, 0)
    else:
        # Small / odd shapes: take the full qkv row block and split in-kernel.
        hpg, gD, HG = heads, H, 1
        full = pl.BlockSpec((1, S, threeH), lambda b, g: (b, 0, 0))
        q_spec = k_spec = v_spec = full
        out_spec = pl.BlockSpec((1, S, H), lambda b, g: (b, 0, 0))
        offs = (0, H, 2 * H)

    return pl.pallas_call(
        functools.partial(_attn_kernel, hpg=hpg, Dh=Dh, offs=offs, scale=scale),
        out_shape=jax.ShapeDtypeStruct((B2, S, H), jnp.bfloat16),
        grid=(B2, HG),
        in_specs=[q_spec, k_spec, v_spec,
                  pl.BlockSpec((1, 1, S), lambda b, g: (b, 0, 0))],
        out_specs=out_spec,
        compiler_params=pltpu.CompilerParams(
            dimension_semantics=("parallel", "parallel"),
            vmem_limit_bytes=_vmem_limit()),
    )(qkv, qkv, qkv, mask_bias)


# ---------------------------------------------------------------------------
# Cross-entropy loss + argmax==0 accuracy reduction
# ---------------------------------------------------------------------------
def _ce_acc_kernel(s_ref, lab_ref, loss_ref, right_ref):
    s = s_ref[...]                     # [B, C] f32
    lab = lab_ref[...]                 # [B, 1] int32
    m = jnp.max(s, axis=-1, keepdims=True)
    lse = jnp.log(jnp.sum(jnp.exp(s - m), axis=-1, keepdims=True)) + m
    cols = jax.lax.broadcasted_iota(jnp.int32, s.shape, 1)
    tgt = jnp.sum(jnp.where(cols == lab, s, 0.0), axis=-1, keepdims=True)
    loss_ref[...] = jnp.mean(lse - tgt, keepdims=True)          # mean-reduced CE
    pred_is_zero = (s[:, 0:1] >= m).astype(jnp.int32)           # argmax == 0
    right_ref[...] = jnp.sum(pred_is_zero, keepdims=True)


def ce_and_acc(score_mat, label):
    B, _ = score_mat.shape
    loss, right = pl.pallas_call(
        _ce_acc_kernel,
        out_shape=(
            jax.ShapeDtypeStruct((1, 1), jnp.float32),
            jax.ShapeDtypeStruct((1, 1), jnp.int32),
        ),
        in_specs=[_VMEM, _VMEM],
        out_specs=(_VMEM, _VMEM),
    )(score_mat.astype(jnp.float32), label.reshape(B, 1).astype(jnp.int32))
    return loss[0, 0], right[0, 0]


# ---------------------------------------------------------------------------
# BERT encoder assembled from the kernels above
# ---------------------------------------------------------------------------
def bert_encoder(params, ids, attn_mask, *, heads):
    B2, S = ids.shape
    H = params["word_emb"].shape[1]
    Dh = H // heads
    scale = 1.0 / math.sqrt(Dh)
    M = B2 * S

    # Embeddings (gather is glue) -> bf16 -> LN kernel (halves the LN HBM read).
    h = (params["word_emb"][ids]
         + params["pos_emb"][:S][None, :, :]
         + params["type_emb"][0][None, None, :])
    h = layernorm(h.reshape(M, H).astype(jnp.bfloat16),
                  params["emb_ln_g"], params["emb_ln_b"])

    # Single un-repeated [B2, 1, S] additive mask bias, broadcast over heads in-kernel.
    mask_bias = ((1.0 - attn_mask.astype(jnp.float32)) * -10000.0).reshape(B2, 1, S)

    for lp in params["layers"]:
        x2 = h                                               # bf16 [M, H]
        # Fused QKV projection: one [H, 3H] matmul; output stays [B2, S, 3H]
        # (free reshape), heads are sliced by the attention BlockSpecs.
        qkv = linear(x2, lp["qkv_w"], lp["qkv_b"])           # bf16 [M, 3H]
        ctx = attention(qkv.reshape(B2, S, 3 * H), mask_bias,
                        heads=heads, Dh=Dh, scale=scale)     # bf16 [B2, S, H]
        ctx = ctx.reshape(M, H)                              # free

        # Attention-output proj + residual + LN1 fused.
        h1 = linear_residual_ln(ctx, lp["o_w"], lp["o_b"], x2,
                                lp["ln1_g"], lp["ln1_b"])
        # FFN: GELU fused into the intermediate matmul epilogue,
        # residual + LN2 fused into the output matmul epilogue.
        inter = linear(h1, lp["i_w"], lp["i_b"], act="gelu")
        h = linear_residual_ln(inter, lp["o2_w"], lp["o2_b"], h1,
                               lp["ln2_g"], lp["ln2_b"])

    cls = h.reshape(B2, S, H)[:, 0, :]                        # [B2, H] bf16
    pooled = linear(cls, params["pooler_w"], params["pooler_b"], act="tanh")
    return h, pooled


def denoise_bert_forward(params, data, *, heads):
    inputx, neginputx = data["inputx"], data["neginputx"]
    mask, negmask = data["mask"], data["negmask"]
    label = data["label"]
    batch = inputx.shape[0]

    ids = jnp.concatenate([inputx, neginputx], axis=0)                      # [2B, S]
    am = jnp.concatenate([mask, negmask], axis=0)                           # [2B, S]
    _, bcls = bert_encoder(params, ids, am, heads=heads)                    # [2B, H]

    # 1-wide score head: kept in plain JAX (negligible FLOPs, avoids masked stores).
    score = (bcls.astype(jnp.float32) @ params["score_w"]
             + params["score_b"]).reshape(-1)                               # [2B]
    pscore, nscore = score[:batch], score[batch:]
    score_mat = jnp.concatenate(
        [pscore[:, None], jnp.tile(nscore[None, :], (batch, 1))], axis=1)   # [B, B+1]

    loss, right = ce_and_acc(score_mat, label)
    # `right` stays a device array (no host sync in the training step).
    acc_result = {"right": right, "pre_num": batch, "actual_num": batch}
    return {"loss": loss, "acc_result": acc_result}


# ---------------------------------------------------------------------------
# Deterministic parameter init (miniature BertModel + score head)
# ---------------------------------------------------------------------------
def init_params(key, *, vocab, max_pos, hidden, layers, inter):
    def nrm(k, shape):
        return 0.02 * jax.random.normal(k, shape, dtype=jnp.float32)

    keys = jax.random.split(key, 4 + layers)
    p = {
        "word_emb": nrm(keys[0], (vocab, hidden)),
        "pos_emb": nrm(keys[1], (max_pos, hidden)),
        "type_emb": nrm(keys[2], (2, hidden)),
        "emb_ln_g": jnp.ones((hidden,), jnp.float32),
        "emb_ln_b": jnp.zeros((hidden,), jnp.float32),
    }
    layer_list = []
    for l in range(layers):
        lk = jax.random.split(keys[4 + l], 4)
        layer_list.append({
            # Fused QKV weight [H, 3H] (columns ordered q | k | v, head-major inside).
            "qkv_w": nrm(lk[0], (hidden, 3 * hidden)),
            "qkv_b": jnp.zeros((3 * hidden,), jnp.float32),
            "o_w": nrm(lk[1], (hidden, hidden)), "o_b": jnp.zeros((hidden,), jnp.float32),
            "ln1_g": jnp.ones((hidden,), jnp.float32), "ln1_b": jnp.zeros((hidden,), jnp.float32),
            "i_w": nrm(lk[2], (hidden, inter)), "i_b": jnp.zeros((inter,), jnp.float32),
            "o2_w": nrm(lk[3], (inter, hidden)), "o2_b": jnp.zeros((hidden,), jnp.float32),
            "ln2_g": jnp.ones((hidden,), jnp.float32), "ln2_b": jnp.zeros((hidden,), jnp.float32),
        })
    p["layers"] = layer_list
    pk = jax.random.split(keys[3], 2)
    p["pooler_w"] = nrm(pk[0], (hidden, hidden))
    p["pooler_b"] = jnp.zeros((hidden,), jnp.float32)
    p["score_w"] = nrm(pk[1], (hidden, 1))              # nn.Linear(hidden, 1)
    p["score_b"] = jnp.zeros((1,), jnp.float32)
    return p


if __name__ == "__main__":
    # Small, BERT-consistent shapes: batch=2, seq=8, hidden=32, 2 heads, 2 layers.
    B, S, H, HEADS, LAYERS, INTER = 2, 8, 32, 2, 2, 64
    VOCAB, MAX_POS = 100, 16

    key = jax.random.PRNGKey(0)
    pkey, k1, k2 = jax.random.split(key, 3)
    params = init_params(pkey, vocab=VOCAB, max_pos=MAX_POS, hidden=H,
                         layers=LAYERS, inter=INTER)

    data = {
        "inputx": jax.random.randint(k1, (B, S), 1, VOCAB, dtype=jnp.int32),
        "neginputx": jax.random.randint(k2, (B, S), 1, VOCAB, dtype=jnp.int32),
        "mask": jnp.ones((B, S), jnp.int32),
        "negmask": jnp.ones((B, S), jnp.int32),
        "label": jnp.zeros((B,), jnp.int32),   # positive example sits at column 0
    }

    out = denoise_bert_forward(params, data, heads=HEADS)
    loss = jax.block_until_ready(out["loss"])
    right = jax.block_until_ready(out["acc_result"]["right"])
    assert bool(jnp.isfinite(loss))
    print("KERNEL_OK")
</pallas_src>

<mosaic_0001>
module attributes {stable_mosaic.version = 11 : i64} {
  func.func @_ln_kernel(%arg0: i32, %arg1: memref<32x32xbf16, #tpu.memory_space<vmem>>, %arg2: memref<1x32xf32, #tpu.memory_space<vmem>>, %arg3: memref<1x32xf32, #tpu.memory_space<vmem>>, %arg4: memref<32x32xbf16, #tpu.memory_space<vmem>>) attributes {dimension_semantics = [#tpu.dimension_semantics<parallel>], iteration_bounds = array<i64: 1>, scalar_prefetch = 0 : i64, scratch_operands = 0 : i64, tpu.core_type = #tpu.core_type<tc>, window_params = [{transform_indices = @transform_0, window_bounds = array<i64: 32, 32>}, {pipeline_mode = #tpu.pipeline_mode<synchronous>, transform_indices = @transform_1, window_bounds = array<i64: 1, 32>}, {pipeline_mode = #tpu.pipeline_mode<synchronous>, transform_indices = @transform_2, window_bounds = array<i64: 1, 32>}, {transform_indices = @transform_3, window_bounds = array<i64: 32, 32>}]} {
    %c0 = arith.constant 0 : index
    %c0_0 = arith.constant 0 : index
    %0 = vector.load %arg1[%c0, %c0_0] : memref<32x32xbf16, #tpu.memory_space<vmem>>, vector<32x32xbf16>
    %1 = arith.extf %0 : vector<32x32xbf16> to vector<32x32xf32>
    %cst = arith.constant dense<0.000000e+00> : vector<32xf32>
    %2 = vector.multi_reduction <add>, %1, %cst [1] : vector<32x32xf32> to vector<32xf32>
    %3 = vector.shape_cast %2 : vector<32xf32> to vector<32x1xf32>
    %cst_1 = arith.constant 3.200000e+01 : f32
    %4 = vector.broadcast %cst_1 : f32 to vector<32x1xf32>
    %5 = arith.divf %3, %4 : vector<32x1xf32>
    %6 = vector.broadcast %5 : vector<32x1xf32> to vector<32x32xf32>
    %7 = arith.subf %1, %6 : vector<32x32xf32>
    %8 = arith.mulf %7, %7 : vector<32x32xf32>
    %cst_2 = arith.constant dense<0.000000e+00> : vector<32xf32>
    %9 = vector.multi_reduction <add>, %8, %cst_2 [1] : vector<32x32xf32> to vector<32xf32>
    %10 = vector.shape_cast %9 : vector<32xf32> to vector<32x1xf32>
    %cst_3 = arith.constant 3.200000e+01 : f32
    %11 = vector.broadcast %cst_3 : f32 to vector<32x1xf32>
    %12 = arith.divf %10, %11 : vector<32x1xf32>
    %13 = vector.broadcast %5 : vector<32x1xf32> to vector<32x32xf32>
    %14 = arith.subf %1, %13 : vector<32x32xf32>
    %cst_4 = arith.constant 9.99999996E-13 : f32
    %15 = vector.broadcast %cst_4 : f32 to vector<32x1xf32>
    %16 = arith.addf %12, %15 : vector<32x1xf32>
    %17 = math.rsqrt %16 : vector<32x1xf32>
    %18 = vector.broadcast %17 : vector<32x1xf32> to vector<32x32xf32>
    %19 = arith.mulf %14, %18 : vector<32x32xf32>
    %c0_5 = arith.constant 0 : index
    %c0_6 = arith.constant 0 : index
    %20 = vector.load %arg2[%c0_5, %c0_6] : memref<1x32xf32, #tpu.memory_space<vmem>>, vector<1x32xf32>
    %21 = vector.broadcast %20 : vector<1x32xf32> to vector<32x32xf32>
    %22 = arith.mulf %19, %21 : vector<32x32xf32>
    %c0_7 = arith.constant 0 : index
    %c0_8 = arith.constant 0 : index
    %23 = vector.load %arg3[%c0_7, %c0_8] : memref<1x32xf32, #tpu.memory_space<vmem>>, vector<1x32xf32>
    %24 = vector.broadcast %23 : vector<1x32xf32> to vector<32x32xf32>
    %25 = arith.addf %22, %24 : vector<32x32xf32>
    %26 = arith.truncf %25 : vector<32x32xf32> to vector<32x32xbf16>
    %c0_9 = arith.constant 0 : index
    %c0_10 = arith.constant 0 : index
    %27 = vector.load %arg4[%c0_9, %c0_10] : memref<32x32xbf16, #tpu.memory_space<vmem>>, vector<32x32xbf16>
    tpu.vector_store %arg4[%c0_9, %c0_10], %26 {strides = array<i32>} : memref<32x32xbf16, #tpu.memory_space<vmem>>, vector<32x32xbf16>,
    return
  }
  func.func @transform_0(%arg0: i32) -> (i32, i32) {
    %c0_i32 = arith.constant 0 : i32
    %c0_i32_0 = arith.constant 0 : i32
    return %arg0, %c0_i32 : i32, i32
  }
  func.func @transform_1(%arg0: i32) -> (i32, i32) {
    %c0_i32 = arith.constant 0 : i32
    %c0_i32_0 = arith.constant 0 : i32
    %c0_i32_1 = arith.constant 0 : i32
    return %c0_i32, %c0_i32_0 : i32, i32
  }
  func.func @transform_2(%arg0: i32) -> (i32, i32) {
    %c0_i32 = arith.constant 0 : i32
    %c0_i32_0 = arith.constant 0 : i32
    %c0_i32_1 = arith.constant 0 : i32
    return %c0_i32, %c0_i32_0 : i32, i32
  }
  func.func @transform_3(%arg0: i32) -> (i32, i32) {
    %c0_i32 = arith.constant 0 : i32
    %c0_i32_0 = arith.constant 0 : i32
    return %arg0, %c0_i32 : i32, i32
  }
}

</mosaic_0001>

<bundles_post_ra>
// kernel: tpu_custom_call.1
= control target key start
LH: loop header
LB: loop body
LE: loop exit
PB: predicated region body
PF: predicated region fallthrough
CT: control target
= control target key end

     0   :  { %8 = vsyncpa [#allocation3], 0  ;;  %s370_s0 = inlined_call_operand.hbm [shape: bf16[32,32], index: 0, kind: input, shape index: {}]   ;;  %s371_s1 = inlined_call_operand.hbm [shape: f32[1,32], index: 1, kind: input, shape index: {}]   ;;  %s372_s2 = inlined_call_operand.vmem [shape: f32[1,32], index: 2, kind: input, shape index: {}]   ;;  %s373_s3 = inlined_call_operand.hbm [shape: bf16[32,32], index: 3, kind: output, shape index: {}]  }
   0x1   :  { %9 = vsyncpa [#allocation6], 0 }
   0x2   :  { %10 = vsyncpa [#allocation4], 0  ;;  %s15_s14 = sshll.u32 %s370_s0, 4  ;;  %s299_s15 = smov [#allocation2]   ;;  %s16_s14 = int_to_ptr.hbm [resolvable:$true] %s15_s14 }
   0x3   :  { %s17_s16 = sshll.u32 %s299_s15, 4  ;;  %s29_s19 = sshll.u32 %s371_s1, 4  ;;  %s18_s16 = int_to_ptr.vmem [resolvable:$true] %s17_s16  ;;  %s30_s19 = int_to_ptr.hbm [resolvable:$true] %s29_s19 }
   0x4   :  { %s300_s20 = smov 64   ;;  %s301_s21 = smov 4  }
   0x5   :  { %23 = dma.hbm_to_vmem [thread:$0]  %s16_s14, 256, %s18_s16, [#allocation3], %s300_s20, %s300_s20, %s301_s21  }
   0x6   :  { %s302_s22 = smov [#allocation5]  }
   0x7   :  { %s31_s23 = sshll.u32 %s302_s22, 4  ;;  %s32_s23 = int_to_ptr.vmem [resolvable:$true] %s31_s23 }
   0x8   :  { %34 = dma.hbm_to_vmem [thread:$0]  %s30_s19, 16, %s32_s23, [#allocation6]  }
   0x9   :  { %293 = dma.done.wait [#allocation3], 256  }
   0xa   :  { %294 = vsyncadd [#allocation3], 4294967040 }
   0xb   :  { %295 = dma.done.wait [#allocation6], 16  }
   0xc   :  { %296 = vsyncadd [#allocation6], 4294967280  ;;  %v202_v0 = vld [vmem:[#allocation2 + $0x8] sm:$0xff]   ;;  %vm53_vm0 = vcmask 261120   ;;  %v195_v1 = vld [vmem:[#allocation2] sm:$0xff]   ;;  %v303_v10 = vmov 32.0  }
   0xd   :  { %v200_v2 = vunpack.c.l.bf16 %v202_v0  ;;  %v196_v3 = vunpack.c.l.bf16 %v195_v1  ;;  %v201_v6 = vunpack.c.h.bf16 %v202_v0  ;;  %v197_v7 = vunpack.c.h.bf16 %v195_v1  ;;  %v209_v63 = vld [vmem:[#allocation5] ss:$0 sm:$0xff]  ;;  %s180_s27 = sshll.u32 %s373_s3, 4  ;;  %s181_s27 = int_to_ptr.hbm [resolvable:$true] %s180_s27 }
   0xe   :  { %211 = vrcp.f32 %v303_v10  ;;  %vm169_vm11 = vcmask 257024  }
   0xf   :  { %v60_v4 = vsel %vm53_vm0, %v200_v2, 0.0  ;;  %v54_v5 = vsel %vm53_vm0, %v196_v3, 0.0  ;;  %v63_v8 = vsel %vm53_vm0, %v201_v6, 0.0  ;;  %v57_v9 = vsel %vm53_vm0, %v197_v7, 0.0 }
  0x10   :  { %61 = vadd.xlane.f32.xlu1 %v60_v4  ;;  %55 = vadd.xlane.f32.xlu0 %v54_v5  ;;  %v210_v4 = vld [vmem:[%s372_s2] ss:$0 sm:$0xff]  ;;  %s304_s2 = smov [#allocation7]  }
  0x11   :  { %s178_s24 = sshll.u32 %s304_s2, 4  ;;  %s179_s24 = int_to_ptr.vmem [resolvable:$true] %s178_s24 }
  0x14   :  { %v212_v11 = vpop.eup %211 }
  0x15   :  { %v67_v12 = vmul.f32 32.0, %v212_v11  ;;  %vm71_vm1 = vweird.f32 %v212_v11 }
  0x17   :  { %v68_v13 = vsub.f32 1.0, %v67_v12 }
  0x18   :  { %64 = vadd.xlane.f32.xlu1 %v63_v8  ;;  %58 = vadd.xlane.f32.xlu0 %v57_v9 }
  0x19   :  { %v69_v14 = vmul.f32 %v212_v11, %v68_v13 }
  0x1b   :  { %v70_v15 = vadd.f32 %v212_v11, %v69_v14 }
  0x1d   :  { %v72_v16 = vsel %vm71_vm1, %v212_v11, %v70_v15 }
  0x83   :  { %v62_v17 = vpop.xlane.xlu1 %61  ;;  %v56_v18 = vpop.xlane.xlu0 %55 }
  0x84   :  { %v75_v19 = vmul.f32 %v72_v16, %v62_v17  ;;  %v73_v20 = vmul.f32 %v72_v16, %v56_v18 }
  0x86   :  { %v338_v21 = vsub.f32 %v200_v2, %v75_v19  ;;  %v77_v22 = vsub.f32 %v196_v3, %v73_v20 }
  0x88   :  { %v83_v23 = vmul.f32 %v338_v21, %v338_v21  ;;  %v81_v24 = vmul.f32 %v77_v22, %v77_v22 }
  0x8a   :  { %v91_v25 = vsel %vm53_vm0, %v83_v23, 0.0  ;;  %v85_v26 = vsel %vm53_vm0, %v81_v24, 0.0 }
  0x8b   :  { %v65_v27 = vpop.xlane.xlu1 %64  ;;  %92 = vadd.xlane.f32.xlu0 %v91_v25  ;;  %86 = vadd.xlane.f32.xlu2 %v85_v26  ;;  %v59_v28 = vpop.xlane.xlu0 %58 }
  0x8c   :  { %v76_v29 = vmul.f32 %v72_v16, %v65_v27  ;;  %v74_v30 = vmul.f32 %v72_v16, %v59_v28 }
  0x8e   :  { %v344_v31 = vsub.f32 %v201_v6, %v76_v29  ;;  %v346_v32 = vsub.f32 %v197_v7, %v74_v30 }
  0x90   :  { %v84_v33 = vmul.f32 %v344_v31, %v344_v31  ;;  %v82_v34 = vmul.f32 %v346_v32, %v346_v32 }
  0x92   :  { %v94_v35 = vsel %vm53_vm0, %v84_v33, 0.0  ;;  %v88_v36 = vsel %vm53_vm0, %v82_v34, 0.0 }
  0x93   :  { %95 = vadd.xlane.f32.xlu1 %v94_v35  ;;  %89 = vadd.xlane.f32.xlu2 %v88_v36 }
  0xfe   :  { %v87_v37 = vpop.xlane.xlu2 %86  ;;  %v93_v38 = vpop.xlane.xlu0 %92 }
  0xff   :  { %v97_v39 = vmul.f32 %v87_v37, %v72_v16  ;;  %v99_v40 = vmul.f32 %v93_v38, %v72_v16 }
 0x101   :  { %v101_v41 = vadd.f32 1e-12, %v97_v39  ;;  %v103_v42 = vadd.f32 1e-12, %v99_v40 }
 0x103   :  { %213 = vrsqrt.f32 %v101_v41  ;;  %vm111_vm4 = vweird.f32 %v101_v41  ;;  %vm131_vm6 = vweird.f32 %v103_v42 }
 0x104   :  { %215 = vrsqrt.f32 %v103_v42 }
 0x106   :  { %v96_v43 = vpop.xlane.xlu1 %95  ;;  %v90_v44 = vpop.xlane.xlu2 %89 }
 0x107   :  { %v100_v45 = vmul.f32 %v96_v43, %v72_v16  ;;  %v98_v46 = vmul.f32 %v90_v44, %v72_v16 }
 0x109   :  { %v214_v47 = vpop.eup %213  ;;  %v104_v48 = vadd.f32 1e-12, %v100_v45  ;;  %v102_v49 = vadd.f32 1e-12, %v98_v46 }
 0x10a   :  { %v216_v50 = vpop.eup %215  ;;  %v106_v51 = vmul.f32 %v214_v47, %v101_v41  ;;  %vm112_vm2 = vweird.f32 %v214_v47 }
 0x10b   :  { %v126_v52 = vmul.f32 %v216_v50, %v103_v42  ;;  %217 = vrsqrt.f32 %v104_v48  ;;  %vm132_vm3 = vweird.f32 %v216_v50  ;;  %vm113_vm5 = vmor %vm111_vm4, %vm112_vm2  ;;  %vm141_vm10 = vweird.f32 %v104_v48 }
 0x10c   :  { %v107_v53 = vmul.f32 %v214_v47, %v106_v51  ;;  %219 = vrsqrt.f32 %v102_v49  ;;  %vm133_vm7 = vmor %vm131_vm6, %vm132_vm3  ;;  %vm121_vm13 = vweird.f32 %v102_v49 }
 0x10d   :  { %v127_v54 = vmul.f32 %v216_v50, %v126_v52 }
 0x10e   :  { %v108_v55 = vmul.f32 0.5, %v107_v53 }
 0x10f   :  { %v128_v56 = vmul.f32 0.5, %v127_v54 }
 0x110   :  { %v109_v57 = vsub.f32 1.5, %v108_v55 }
 0x111   :  { %v218_v58 = vpop.eup %217  ;;  %v129_v59 = vsub.f32 1.5, %v128_v56 }
 0x112   :  { %v220_v60 = vpop.eup %219  ;;  %v110_v61 = vmul.f32 %v214_v47, %v109_v57  ;;  %v136_v62 = vmul.f32 %v218_v58, %v104_v48  ;;  %vm142_vm8 = vweird.f32 %v218_v58 }
 0x113   :  { %v130_v0 = vmul.f32 %v216_v50, %v129_v59  ;;  %v116_v1 = vmul.f32 %v220_v60, %v102_v49  ;;  %vm122_vm9 = vweird.f32 %v220_v60  ;;  %vm143_vm12 = vmor %vm141_vm10, %vm142_vm8 }
 0x114   :  { %v114_v2 = vsel %vm113_vm5, %v214_v47, %v110_v61  ;;  %v137_v3 = vmul.f32 %v218_v58, %v136_v62  ;;  %vm123_vm14 = vmor %vm121_vm13, %vm122_vm9 }
 0x115   :  { %v145_v5 = vmul.f32 %v114_v2, %v77_v22  ;;  %v134_v6 = vsel %vm133_vm7, %v216_v50, %v130_v0  ;;  %v117_v7 = vmul.f32 %v220_v60, %v116_v1 }
 0x116   :  { %v147_v8 = vmul.f32 %v134_v6, %v338_v21  ;;  %v138_v9 = vmul.f32 0.5, %v137_v3 }
 0x117   :  { %v153_v10 = vmul.f32 %v209_v63, %v145_v5  ;;  %v118_v11 = vmul.f32 0.5, %v117_v7 }
 0x118   :  { %v155_v12 = vmul.f32 %v209_v63, %v147_v8  ;;  %v139_v13 = vsub.f32 1.5, %v138_v9 }
 0x119   :  { %v161_v14 = vadd.f32 %v210_v4, %v153_v10  ;;  %v119_v15 = vsub.f32 1.5, %v118_v11 }
 0x11a   :  { %v163_v16 = vadd.f32 %v210_v4, %v155_v12  ;;  %v140_v17 = vmul.f32 %v218_v58, %v139_v13 }
 0x11b   :  { %v165_v18 = vpack.c.bf16 %v161_v14, %v161_v14  ;;  %v120_v19 = vmul.f32 %v220_v60, %v119_v15 }
 0x11c   :  { %v167_v20 = vpack.c.bf16 %v163_v16, %v163_v16  ;;  %v144_v22 = vsel %vm143_vm12, %v218_v58, %v140_v17 }
 0x11d   :  { %v148_v21 = vmul.f32 %v144_v22, %v344_v31  ;;  %v124_v23 = vsel %vm123_vm14, %v220_v60, %v120_v19  ;;  %170 = vst.msk [vmem:[#allocation7] sm:$0xf] %vm169_vm11, %v165_v18 }
 0x11e   :  { %v146_v24 = vmul.f32 %v124_v23, %v346_v32  ;;  %172 = vst.msk [vmem:[#allocation7 + $0x8] sm:$0xf] %vm169_vm11, %v167_v20 }
 0x11f   :  { %v156_v25 = vmul.f32 %v209_v63, %v148_v21 }
 0x120   :  { %v154_v26 = vmul.f32 %v209_v63, %v146_v24 }
 0x121   :  { %v164_v27 = vadd.f32 %v210_v4, %v156_v25 }
 0x122   :  { %v162_v28 = vadd.f32 %v210_v4, %v154_v26 }
 0x123   :  { %v168_v29 = vpack.c.bf16 %v164_v27, %v164_v27 }
 0x124   :  { %v166_v30 = vpack.c.bf16 %v162_v28, %v162_v28 }
 0x125   :  { %173 = vst.msk [vmem:[#allocation7 + $0xc] sm:$0xf] %vm169_vm11, %v168_v29 }
 0x126   :  { %171 = vst.msk [vmem:[#allocation7 + $0x4] sm:$0xf] %vm169_vm11, %v166_v30 }
 0x127   :  { %186 = dma.vmem_to_hbm [thread:$0]  %s179_s24, 256, %s181_s27, [#allocation4], %s300_s20, %s300_s20, %s301_s21  }
 0x128   :  { %297 = dma.done.wait [#allocation4], 256  }
 0x129   :  { %298 = vsyncadd [#allocation4], 4294967040 }
 0x12a   :  { %191 = vsyncpa [#allocation3], 1 }
 0x12b   :  { %192 = vsyncpa [#allocation6], 1 }
 0x12c   :  { %193 = vsyncpa [#allocation4], 1 }

</bundles_post_ra>
